<compile_context>
chip_gen: v6e
topology: v6e:2x2x1
jax: 0.10.0
libtpu: 0.0.40
codegen_flags: <defaults>
</compile_context>

<pallas_src>
import jax
import jax.numpy as jnp
from jax.experimental import pallas as pl
from jax.experimental.pallas import tpu as pltpu


def cls_head_kernel(x_ref, w1_ref, b1_ref, w2_ref, b2_ref, out_ref):
    # fc1 (MXU, f32 accumulate) + bias + ReLU.
    h = jnp.dot(x_ref[...], w1_ref[...], preferred_element_type=jnp.float32) + b1_ref[...]
    h = jnp.maximum(h, 0.0)

    # fc2 -> lane-dense padded logits; pad columns carry bias -1e30 so exp() == 0 there.
    logits = (
        jnp.dot(h.astype(w2_ref.dtype), w2_ref[...], preferred_element_type=jnp.float32)
        + b2_ref[...]
    )

    # Plain row softmax (pad lanes contribute exactly 0 to the denominator).
    m = jnp.max(logits, axis=-1, keepdims=True)
    e = jnp.exp(logits - m)
    denom = jnp.sum(e, axis=-1, keepdims=True)
    out_ref[...] = (e * pl.reciprocal(denom, approx=True)).astype(out_ref.dtype)


def fuse_params(params, *, dtype=jnp.float32):
    """Keep only the cls head (the reg head's 1-logit softmax is identically 1.0) and
    pad fc2's output dimension to a lane-dense multiple of 128.

    Pass dtype=jnp.bfloat16 at scale to halve resident-weight VMEM / HBM traffic and hit
    native MXU throughput; biases stay float32 (MXU accumulates in f32 either way).
    """
    dim_in, nc = params["w2c"].shape
    nc_pad = max(128, ((nc + 127) // 128) * 128)
    w1 = params["w1c"].astype(dtype)
    b1 = params["b1c"].astype(jnp.float32)
    w2 = jnp.zeros((dim_in, nc_pad), dtype).at[:, :nc].set(params["w2c"].astype(dtype))
    b2 = (
        jnp.full((1, nc_pad), -1e30, jnp.float32)
        .at[:, :nc]
        .set(params["b2c"].astype(jnp.float32))
    )
    return {"w1": w1, "b1": b1, "w2": w2, "b2": b2, "num_classes": nc, "nc_pad": nc_pad}


def basic_twin_head(x, fused, *, tb=None):
    """x: [B, dim_in]. fused: output of fuse_params.
    Returns (cls [B, num_classes] softmax probs, offset [B, 1] == 1.0)."""
    B, dim_in = x.shape
    nc, nc_pad = fused["num_classes"], fused["nc_pad"]
    w1, b1, w2, b2 = fused["w1"], fused["b1"], fused["w2"], fused["b2"]

    # Cast the streamed operand once, outside the kernel (bf16 halves HBM read traffic
    # and the double-buffered x tile in VMEM when bf16 weights are used).
    x = x.astype(w1.dtype)
    itemsize = jnp.dtype(w1.dtype).itemsize

    # Batch tile: multiple of 128 (MXU M granularity on all gens), sized so that
    # 2x x-tile + the materialized h intermediate + 2x out-tile stay within ~24 MiB,
    # leaving room for the single-buffered resident weights (v7x 64 MiB/TC).
    if tb is None:
        if B <= 512:
            tb = B
        else:
            per_row = 2 * dim_in * itemsize + dim_in * 4 + 2 * nc_pad * 4
            tb = min(512, max(128, ((24 << 20) // per_row) // 128 * 128))

    resident_bytes = (w1.size + w2.size) * itemsize + (b1.size + b2.size) * 4
    streamed_bytes = tb * (2 * dim_in * itemsize + dim_in * 4 + 2 * nc_pad * 4)
    vmem_limit = int(
        min(100 << 20, max(32 << 20, resident_bytes + streamed_bytes + (8 << 20)))
    )

    # Constant index_map -> single-buffer the resident operands (halves their VMEM).
    # (Small compatibility guard: fall back to default pipelining if unavailable.)
    _buffered = getattr(pl, "Buffered", None)
    resident_mode = _buffered(1) if _buffered is not None else None

    out = pl.pallas_call(
        cls_head_kernel,
        out_shape=jax.ShapeDtypeStruct((B, nc_pad), jnp.float32),
        grid=(pl.cdiv(B, tb),),
        in_specs=[
            pl.BlockSpec((tb, dim_in), lambda i: (i, 0)),  # x: streamed over batch
            pl.BlockSpec((dim_in, dim_in), lambda i: (0, 0), pipeline_mode=resident_mode),
            pl.BlockSpec((1, dim_in), lambda i: (0, 0), pipeline_mode=resident_mode),
            pl.BlockSpec((dim_in, nc_pad), lambda i: (0, 0), pipeline_mode=resident_mode),
            pl.BlockSpec((1, nc_pad), lambda i: (0, 0), pipeline_mode=resident_mode),
        ],
        out_specs=pl.BlockSpec((tb, nc_pad), lambda i: (i, 0)),
        compiler_params=pltpu.CompilerParams(
            dimension_semantics=("parallel",),  # batch tiles shard across TCs on v7x
            vmem_limit_bytes=vmem_limit,
        ),
        cost_estimate=pl.CostEstimate(
            flops=2 * B * dim_in * (dim_in + nc_pad),
            transcendentals=B * nc_pad,
            bytes_accessed=int(B * dim_in * itemsize + B * nc_pad * 4 + resident_bytes),
        ),
    )(x, w1, b1, w2, b2)

    # Slice the lane-dense slab in plain JAX; the reg-head softmax over a single logit
    # is identically 1.0, so the offset output needs no kernel compute at all.
    return out[:, :nc], jnp.ones((B, 1), jnp.float32)


def init_params(key, dim_in, num_classes):
    """Deterministic init mimicking nn.Linear's uniform(-1/sqrt(fan_in), +1/sqrt(fan_in)).
    Weights are stored pre-transposed as [in, out]; biases as [1, out]."""
    ks = jax.random.split(key, 8)
    bound1 = 1.0 / jnp.sqrt(dim_in)

    def u(k, shape, bound):
        return jax.random.uniform(k, shape, jnp.float32, -bound, bound)

    return {
        # cls head
        "w1c": u(ks[0], (dim_in, dim_in), bound1),
        "b1c": u(ks[1], (1, dim_in), bound1),
        "w2c": u(ks[2], (dim_in, num_classes), bound1),
        "b2c": u(ks[3], (1, num_classes), bound1),
        # reg head (kept for interface fidelity; provably dead in the forward pass)
        "w1r": u(ks[4], (dim_in, dim_in), bound1),
        "b1r": u(ks[5], (1, dim_in), bound1),
        "w2r": u(ks[6], (dim_in, 1), bound1),
        "b2r": u(ks[7], (1, 1), bound1),
    }


def reference(x, p):
    """Pure-JAX reference of BasicTwinHead.forward (eval mode)."""
    h_c = jnp.maximum(x @ p["w1c"] + p["b1c"], 0.0)
    cls = jax.nn.softmax(h_c @ p["w2c"] + p["b2c"], axis=-1)
    h_r = jnp.maximum(x @ p["w1r"] + p["b1r"], 0.0)
    off = jax.nn.softmax(h_r @ p["w2r"] + p["b2r"], axis=-1)
    return cls, off


if __name__ == "__main__":
    B, dim_in, num_classes = 8, 32, 16
    key = jax.random.PRNGKey(0)
    kx, kp = jax.random.split(key)

    x = jax.random.normal(kx, (B, dim_in), jnp.float32)
    params = init_params(kp, dim_in, num_classes)

    # f32 weights here keep the check against the exact-f32 reference tight; use
    # dtype=jnp.bfloat16 at scale for native MXU throughput and halved HBM traffic.
    fused = fuse_params(params, dtype=jnp.float32)

    cls, off = basic_twin_head(x, fused)
    jax.block_until_ready((cls, off))

    cls_ref, off_ref = reference(x, params)
    assert cls.shape == (B, num_classes) and off.shape == (B, 1)
    # Softmax normalization uses the approximate (EUP) reciprocal -> slightly looser tol.
    assert jnp.allclose(cls, cls_ref, atol=2e-3, rtol=2e-3)
    # reg-head softmax over a single logit is identically 1.0 (faithful to PyTorch).
    assert jnp.allclose(off, 1.0, atol=1e-6)
    assert jnp.allclose(off, off_ref, atol=1e-6)

    print("KERNEL_OK")
</pallas_src>

<mosaic_0001>
module attributes {stable_mosaic.version = 11 : i64} {
  func.func @cls_head_kernel(%arg0: i32, %arg1: memref<8x32xf32, #tpu.memory_space<vmem>>, %arg2: memref<32x32xf32, #tpu.memory_space<vmem>>, %arg3: memref<1x32xf32, #tpu.memory_space<vmem>>, %arg4: memref<32x128xf32, #tpu.memory_space<vmem>>, %arg5: memref<1x128xf32, #tpu.memory_space<vmem>>, %arg6: memref<8x128xf32, #tpu.memory_space<vmem>>) attributes {dimension_semantics = [#tpu.dimension_semantics<parallel>], iteration_bounds = array<i64: 1>, scalar_prefetch = 0 : i64, scratch_operands = 0 : i64, tpu.core_type = #tpu.core_type<tc>, window_params = [{transform_indices = @transform_0, window_bounds = array<i64: 8, 32>}, {pipeline_mode = #tpu.pipeline_mode<synchronous>, transform_indices = @transform_1, window_bounds = array<i64: 32, 32>}, {pipeline_mode = #tpu.pipeline_mode<synchronous>, transform_indices = @transform_2, window_bounds = array<i64: 1, 32>}, {pipeline_mode = #tpu.pipeline_mode<synchronous>, transform_indices = @transform_3, window_bounds = array<i64: 32, 128>}, {pipeline_mode = #tpu.pipeline_mode<synchronous>, transform_indices = @transform_4, window_bounds = array<i64: 1, 128>}, {transform_indices = @transform_5, window_bounds = array<i64: 8, 128>}]} {
    %c0 = arith.constant 0 : index
    %c0_0 = arith.constant 0 : index
    %0 = vector.load %arg1[%c0, %c0_0] : memref<8x32xf32, #tpu.memory_space<vmem>>, vector<8x32xf32>
    %c0_1 = arith.constant 0 : index
    %c0_2 = arith.constant 0 : index
    %1 = vector.load %arg2[%c0_1, %c0_2] : memref<32x32xf32, #tpu.memory_space<vmem>>, vector<32x32xf32>
    %cst = arith.constant dense<0.000000e+00> : vector<8x32xf32>
    %2 = tpu.matmul %0, %1, %cst {dimension_numbers = #tpu.dot_dimension_numbers<[1], [0], [0], [1], [0, 0, 1, 1], [], []>} : vector<8x32xf32>, vector<32x32xf32>, vector<8x32xf32> -> vector<8x32xf32>
    %c0_3 = arith.constant 0 : index
    %c0_4 = arith.constant 0 : index
    %3 = vector.load %arg3[%c0_3, %c0_4] : memref<1x32xf32, #tpu.memory_space<vmem>>, vector<1x32xf32>
    %4 = vector.broadcast %3 : vector<1x32xf32> to vector<8x32xf32>
    %5 = arith.addf %2, %4 : vector<8x32xf32>
    %cst_5 = arith.constant 0.000000e+00 : f32
    %6 = vector.broadcast %cst_5 : f32 to vector<8x32xf32>
    %7 = arith.maximumf %5, %6 : vector<8x32xf32>
    %c0_6 = arith.constant 0 : index
    %c0_7 = arith.constant 0 : index
    %8 = vector.load %arg4[%c0_6, %c0_7] : memref<32x128xf32, #tpu.memory_space<vmem>>, vector<32x128xf32>
    %cst_8 = arith.constant dense<0.000000e+00> : vector<8x128xf32>
    %9 = tpu.matmul %7, %8, %cst_8 {dimension_numbers = #tpu.dot_dimension_numbers<[1], [0], [0], [1], [0, 0, 1, 1], [], []>} : vector<8x32xf32>, vector<32x128xf32>, vector<8x128xf32> -> vector<8x128xf32>
    %c0_9 = arith.constant 0 : index
    %c0_10 = arith.constant 0 : index
    %10 = vector.load %arg5[%c0_9, %c0_10] : memref<1x128xf32, #tpu.memory_space<vmem>>, vector<1x128xf32>
    %11 = vector.broadcast %10 : vector<1x128xf32> to vector<8x128xf32>
    %12 = arith.addf %9, %11 : vector<8x128xf32>
    %cst_11 = arith.constant dense<0xFF800000> : vector<8xf32>
    %13 = vector.multi_reduction <maximumf>, %12, %cst_11 [1] : vector<8x128xf32> to vector<8xf32>
    %14 = vector.shape_cast %13 : vector<8xf32> to vector<8x1xf32>
    %15 = vector.broadcast %14 : vector<8x1xf32> to vector<8x128xf32>
    %16 = arith.subf %12, %15 : vector<8x128xf32>
    %17 = math.exp %16 : vector<8x128xf32>
    %cst_12 = arith.constant dense<0.000000e+00> : vector<8xf32>
    %18 = vector.multi_reduction <add>, %17, %cst_12 [1] : vector<8x128xf32> to vector<8xf32>
    %19 = vector.shape_cast %18 : vector<8xf32> to vector<8x1xf32>
    %20 = tpu.reciprocal %19 {approx = true} : vector<8x1xf32> -> vector<8x1xf32>
    %21 = vector.broadcast %20 : vector<8x1xf32> to vector<8x128xf32>
    %22 = arith.mulf %17, %21 : vector<8x128xf32>
    %c0_13 = arith.constant 0 : index
    %c0_14 = arith.constant 0 : index
    %23 = vector.load %arg6[%c0_13, %c0_14] : memref<8x128xf32, #tpu.memory_space<vmem>>, vector<8x128xf32>
    tpu.vector_store %arg6[%c0_13, %c0_14], %22 {strides = array<i32>} : memref<8x128xf32, #tpu.memory_space<vmem>>, vector<8x128xf32>,
    return
  }
  func.func @transform_0(%arg0: i32) -> (i32, i32) {
    %c0_i32 = arith.constant 0 : i32
    %c0_i32_0 = arith.constant 0 : i32
    return %arg0, %c0_i32 : i32, i32
  }
  func.func @transform_1(%arg0: i32) -> (i32, i32) {
    %c0_i32 = arith.constant 0 : i32
    %c0_i32_0 = arith.constant 0 : i32
    %c0_i32_1 = arith.constant 0 : i32
    return %c0_i32, %c0_i32_0 : i32, i32
  }
  func.func @transform_2(%arg0: i32) -> (i32, i32) {
    %c0_i32 = arith.constant 0 : i32
    %c0_i32_0 = arith.constant 0 : i32
    %c0_i32_1 = arith.constant 0 : i32
    return %c0_i32, %c0_i32_0 : i32, i32
  }
  func.func @transform_3(%arg0: i32) -> (i32, i32) {
    %c0_i32 = arith.constant 0 : i32
    %c0_i32_0 = arith.constant 0 : i32
    %c0_i32_1 = arith.constant 0 : i32
    return %c0_i32, %c0_i32_0 : i32, i32
  }
  func.func @transform_4(%arg0: i32) -> (i32, i32) {
    %c0_i32 = arith.constant 0 : i32
    %c0_i32_0 = arith.constant 0 : i32
    %c0_i32_1 = arith.constant 0 : i32
    return %c0_i32, %c0_i32_0 : i32, i32
  }
  func.func @transform_5(%arg0: i32) -> (i32, i32) {
    %c0_i32 = arith.constant 0 : i32
    %c0_i32_0 = arith.constant 0 : i32
    return %arg0, %c0_i32 : i32, i32
  }
}

</mosaic_0001>

<bundles_post_ra>
// kernel: tpu_custom_call.1
= control target key start
LH: loop header
LB: loop body
LE: loop exit
PB: predicated region body
PF: predicated region fallthrough
CT: control target
= control target key end

     0   :  { %10 = vsyncpa [#allocation3], 0  ;;  %s449_s0 = inlined_call_operand.hbm [shape: f32[8,32], index: 0, kind: input, shape index: {}]   ;;  %s450_s1 = inlined_call_operand.hbm [shape: f32[32,32], index: 1, kind: input, shape index: {}]   ;;  %s451_s2 = inlined_call_operand.vmem [shape: f32[1,32], index: 2, kind: input, shape index: {}]   ;;  %s452_s3 = inlined_call_operand.hbm [shape: f32[32,128], index: 3, kind: input, shape index: {}]   ;;  %s453_s4 = inlined_call_operand.vmem [shape: f32[1,128], index: 4, kind: input, shape index: {}]   ;;  %s454_s5 = inlined_call_operand.hbm [shape: f32[8,128], index: 5, kind: output, shape index: {}]  }
   0x1   :  { %11 = vsyncpa [#allocation6], 0 }
   0x2   :  { %12 = vsyncpa [#allocation4], 0  ;;  %s391_s18 = smov [#allocation5]  }
   0x3   :  { %s28_s19 = sshll.u32 %s391_s18, 4  ;;  %s29_s19 = int_to_ptr.vmem [resolvable:$true] %s28_s19 }
   0x4   :  { %s313_s20 = scalar_lea.vmem %s29_s19, 512  ;;  %p318_p1 = scmp.lt.s32.totalorder %s29_s19, %s29_s19 }
   0x5   :  { %p314_p0 = scmp.ne.s32.totalorder %s29_s19, %s313_s20  ;;  %p319_p2 = scmp.lt.s32.totalorder %s313_s20, %s313_s20 }
   0x7   :  { %p320_p3 = por %p319_p2, %p318_p1 }
   0x9   :  { %p321_p4 = pnand %p320_p3, %p314_p0 }
   0xb   :  { %324 = shalt.err (!%p321_p4)
}
   0xc   :  { %s392_s21 = smov 128   ;;  %s393_s22 = smov 8  }
   0xd   :  { %34 = dma.hbm_to_vmem [thread:$0]  %s450_s1, 512, %s29_s19, [#allocation6], %s392_s21, %s392_s21, %s393_s22  }
   0xe   :  { %s394_s25 = smov [#allocation2]   ;;  %s395_s27 = smov [#allocation7]  }
   0xf   :  { %s19_s26 = sshll.u32 %s394_s25, 4  ;;  %s42_s28 = sshll.u32 %s395_s27, 4  ;;  %s20_s26 = int_to_ptr.vmem [resolvable:$true] %s19_s26  ;;  %s43_s28 = int_to_ptr.vmem [resolvable:$true] %s42_s28 }
  0x10   :  { %s333_s29 = scalar_lea.vmem %s20_s26, 128  ;;  %p338_p6 = scmp.lt.s32.totalorder %s20_s26, %s20_s26 }
  0x11   :  { %p334_p5 = scmp.ne.s32.totalorder %s20_s26, %s333_s29  ;;  %p339_p7 = scmp.lt.s32.totalorder %s333_s29, %s333_s29 }
  0x13   :  { %p340_p8 = por %p339_p7, %p338_p6 }
  0x15   :  { %p341_p9 = pnand %p340_p8, %p334_p5 }
  0x17   :  { %344 = shalt.err (!%p341_p9)
}
  0x18   :  { %22 = dma.hbm_to_vmem [thread:$0]  %s449_s0, 128, %s20_s26, [#allocation3]  }
  0x19   :  { %s353_s7 = scalar_lea.vmem %s43_s28, 512  ;;  %p358_p11 = scmp.lt.s32.totalorder %s43_s28, %s43_s28 }
  0x1a   :  { %p354_p10 = scmp.ne.s32.totalorder %s43_s28, %s353_s7  ;;  %p359_p12 = scmp.lt.s32.totalorder %s353_s7, %s353_s7 }
  0x1c   :  { %p360_p13 = por %p359_p12, %p358_p11 }
  0x1e   :  { %p361_p0 = pnand %p360_p13, %p354_p10 }
  0x20   :  { %364 = shalt.err (!%p361_p0)
}
  0x21   :  { %48 = dma.hbm_to_vmem [thread:$0]  %s452_s3, 512, %s43_s28, [#allocation6], %s392_s21, %s392_s21, %s393_s22  }
  0x22   :  { %385 = dma.done.wait [#allocation3], 128  }
  0x23   :  { %386 = vsyncadd [#allocation3], 4294967168 }
  0x24   :  { %387 = dma.done.wait [#allocation6], 1024  }
  0x25   :  { %388 = vsyncadd [#allocation6], 4294966272  ;;  %v396_v0 = vmov 0.0   ;;  %vm397_vm0 = vmmov 0   ;;  %v64_v1 = vld [vmem:[#allocation5 + $0x18] sm:$0xff]  ;;  %v63_v2 = vld [vmem:[#allocation5 + $0x10] sm:$0xff] }
  0x26   :  { %271 = vmatprep.subr.mxu0 %v396_v0  ;;  %279 = vmatprep.mubr.msk.f32.mxu0 %vm397_vm0, %v396_v0  ;;  %v150_v3 = vld [vmem:[#allocation7 + $0x18] sm:$0xff]  ;;  %v62_v4 = vld [vmem:[#allocation5 + $0x8] sm:$0xff]  ;;  %v61_v5 = vld [vmem:[#allocation5] sm:$0xff]  ;;  %vm72_vm1 = vcmask 261120  }
  0x27   :  { %282 = vmatprep.subr.mxu1 %v396_v0  ;;  %290 = vmatprep.mubr.msk.f32.mxu1 %vm397_vm0, %v396_v0  ;;  %v60_v6 = vld [vmem:[#allocation2] sm:$0xff]  ;;  %v149_v7 = vld [vmem:[#allocation7 + $0x10] sm:$0xff]  ;;  %v148_v8 = vld [vmem:[#allocation7 + $0x8] sm:$0xff] }
  0x28   :  { %272 = vmatpush3.msra.mxu0 %v64_v1  ;;  %283 = vmatpush3.msra.mxu1 %v150_v3  ;;  %v147_v9 = vld [vmem:[#allocation7] sm:$0xff]  ;;  %v257_v10 = vld [vmem:[%s451_s2] ss:$0 sm:$0xff]  ;;  %s398_s2 = smov [#allocation8]  }
  0x29   :  { %273 = vmatprep.subr.mxu0 %v396_v0  ;;  %284 = vmatprep.subr.mxu1 %v396_v0  ;;  %v259_v15 = vld [vmem:[%s453_s4] ss:$0 sm:$0xff]  ;;  %s247_s11 = sshll.u32 %s398_s2, 4  ;;  %s248_s11 = int_to_ptr.vmem [resolvable:$true] %s247_s11 }
  0x2a   :  { %274 = vmatpush3.msra.mxu0 %v63_v2  ;;  %285 = vmatpush3.msra.mxu1 %v149_v7  ;;  %s365_s12 = scalar_lea.vmem %s248_s11, 128  ;;  %p370_p2 = scmp.lt.s32.totalorder %s248_s11, %s248_s11 }
  0x2b   :  { %275 = vmatprep.subr.mxu0 %v396_v0  ;;  %286 = vmatprep.subr.mxu1 %v396_v0  ;;  %p366_p1 = scmp.ne.s32.totalorder %s248_s11, %s365_s12  ;;  %p371_p3 = scmp.lt.s32.totalorder %s365_s12, %s365_s12 }
  0x2c   :  { %276 = vmatpush3.msra.mxu0 %v62_v4  ;;  %287 = vmatpush3.msra.mxu1 %v148_v8 }
  0x2d   :  { %277 = vmatprep.subr.mxu0 %v396_v0  ;;  %288 = vmatprep.subr.mxu1 %v396_v0  ;;  %p372_p4 = por %p371_p3, %p370_p2 }
  0x2e   :  { %278 = vmatpush3.msra.mxu0 %v61_v5  ;;  %289 = vmatpush3.msra.mxu1 %v147_v9 }
  0x2f   :  { %280 = vmatmul.mubr.msk.f32.vlgmr.msra.gmra.mxu0 %vm72_vm1, %v60_v6  ;;  %p373_p5 = pnand %p372_p4, %p366_p1 }
  0xef   :  { %v142_v11 = vpop.f32.mrf.mxu0 }
  0xf0   :  { %v143_v12 = vadd.f32 %v257_v10, %v142_v11 }
  0xf1   :  { %v281_v13 = vpop.f32.mrf.mxu0 }
  0xf2   :  { %v146_v14 = vmax.f32 %v143_v12, 0.0 }
  0xf4   :  { %291 = vmatmul.mubr.msk.f32.vlgmr.msra.gmra.mxu1 %vm72_vm1, %v146_v14 }
 0x1b4   :  { %v227_v16 = vpop.f32.mrf.mxu1 }
 0x1b5   :  { %v228_v17 = vadd.f32 %v259_v15, %v227_v16 }
 0x1b6   :  { %v292_v18 = vpop.f32.mrf.mxu1 }
 0x1b7   :  { %231 = vmax.xlane.f32.xlu0 %v228_v17 }
 0x240   :  { %v232_v19 = vpop.xlane.xlu0 %231 }
 0x241   :  { %v233_v20 = vsub.f32 %v228_v17, %v232_v19 }
 0x243   :  { %v234_v21 = vmul.f32 1.442695, %v233_v20 }
 0x245   :  { %301 = vpow2.f32 %v234_v21 }
 0x252   :  { %v302_v22 = vpop.eup %301 }
 0x253   :  { %236 = vadd.xlane.f32.xlu0 %v302_v22 }
 0x2dc   :  { %v237_v23 = vpop.xlane.xlu0 %236 }
 0x2dd   :  { %303 = vrcp.f32 %v237_v23 }
 0x2ea   :  { %v304_v24 = vpop.eup %303 }
 0x2eb   :  { %v239_v25 = vmul.f32 %v304_v24, %v302_v22 }
 0x2ed   :  { %240 = vst [vmem:[#allocation8] sm:$0xff] %v239_v25 }
 0x2ee   :  { %376 = shalt.err (!%p373_p5)
}
 0x2ef   :  { %250 = dma.vmem_to_hbm [thread:$0]  %s248_s11, 128, %s454_s5, [#allocation4]  }
 0x2f0   :  { %389 = dma.done.wait [#allocation4], 128  }
 0x2f1   :  { %390 = vsyncadd [#allocation4], 4294967168 }
 0x2f2   :  { %254 = vsyncpa [#allocation3], 1 }
 0x2f3   :  { %255 = vsyncpa [#allocation6], 1 }
 0x2f4   :  { %256 = vsyncpa [#allocation4], 1 }

</bundles_post_ra>
